<compile_context>
chip_gen: v7x
topology: tpu7x:2x2x1
jax: 0.10.0
libtpu: 0.0.40
codegen_flags: <defaults>
</compile_context>

<pallas_src>
import jax
import jax.numpy as jnp
from jax.experimental import pallas as pl
from jax.experimental.pallas import tpu as pltpu


_LANE = 128
_SUBLANE = 8


def _round_up(x, m):
    return (x + m - 1) // m * m


# ----------------------------------------------------------------------------
# Pallas kernel: fused MADE forward + elementwise affine transform + logabsdet
# ----------------------------------------------------------------------------
def _maf_forward_kernel(x_ref, w1_ref, b1_ref, w2_ref, b2_ref, w3_ref, b3_ref,
                        out_ref, lad_ref):
    """One batch tile.

    x_ref  : [BT, D]   f32   (native feature width, no lane padding)
    w1_ref : [D,  Hp]  bf16  (pre-masked, hidden dim zero-padded to Hp)
    b1_ref : [1,  Hp]  f32
    w2_ref : [Hp, Hp]  bf16
    b2_ref : [1,  Hp]  f32
    w3_ref : [Hp, 2D]  bf16  (merged head: cols [0:D]=raw scale, [D:2D]=shift)
    b3_ref : [1,  2D]  f32
    out_ref: [BT, D]   f32
    lad_ref: [BT, 1]   f32
    """
    d = x_ref.shape[-1]

    x = x_ref[...]                        # f32 copy, reused by the affine transform
    x_bf = x.astype(jnp.bfloat16)         # bf16 copy feeds the MXU

    # --- autoregressive_net (MADE; weights pre-masked & zero-padded) ---------
    h1 = jnp.dot(x_bf, w1_ref[...], preferred_element_type=jnp.float32) + b1_ref[...]
    h1 = jnp.maximum(h1, 0.0).astype(jnp.bfloat16)                     # ReLU

    h2 = jnp.dot(h1, w2_ref[...], preferred_element_type=jnp.float32) + b2_ref[...]
    h2 = jnp.maximum(h2, 0.0).astype(jnp.bfloat16)                     # ReLU

    # Single merged output-head matmul (2D-wide N fills the MXU for large D).
    params = jnp.dot(h2, w3_ref[...], preferred_element_type=jnp.float32) + b3_ref[...]
    raw_scale = params[:, :d]
    shift = params[:, d:]

    # --- _elementwise_forward -------------------------------------------------
    scale = jax.nn.softplus(raw_scale) + 1e-3          # [BT, D], strictly > 0
    out_ref[...] = scale * x + shift
    lad_ref[...] = jnp.sum(jnp.log(scale), axis=-1, keepdims=True)


# ----------------------------------------------------------------------------
# Tiling / VMEM-budget helpers
# ----------------------------------------------------------------------------
def _pick_batch_tile(B):
    if B >= 2048:
        return 1024                     # amortize per-grid-step overhead (v5e/v6e headroom)
    if B >= 16:
        # >= 2 batch tiles so ("parallel",) can shard across v7x's two TensorCores.
        return min(512, _round_up(-(-B // 2), _SUBLANE))
    return _round_up(max(B, 1), _SUBLANE)


def _pick_vmem_limit(bt, d, hp):
    f32b, bf16b = 4, 2
    # double-buffered streamed activations (x in, out + lad out)
    act = 2 * bt * d * f32b + 2 * (bt * d * f32b + bt * f32b)
    # VMEM-resident weights/biases (pipeline still double-buffers constant blocks)
    wgt = 2 * ((d * hp + hp * hp + hp * 2 * d) * bf16b + (2 * hp + 2 * d) * f32b)
    # in-kernel live intermediates (x/x_bf, h1/h2, params, scale/shift)
    live = bt * (2 * d + 2 * hp + 4 * d) * f32b
    need = act + wgt + live + (4 << 20)                 # slack for compiler scratch
    try:
        phys = int(pltpu.get_tpu_info().vmem_capacity_bytes)   # 128 MiB v5e/v6e, 64 MiB v7x
    except Exception:
        phys = 64 << 20                                 # conservative: assume v7x
    cap = (phys * 3) // 4
    return int(max(32 << 20, min(need, cap)))


# ----------------------------------------------------------------------------
# Wrapper: glue (mask/pad/cast weights only) + pallas_call
# ----------------------------------------------------------------------------
@jax.jit
def autoregressive_transform_forward(x, w1m, b1, w2m, b2, w3m, b3):
    """Forward pass of the masked-affine AutoregressiveTransform.

    x   : [B, D] f32
    w1m : [D, H]  pre-masked     b1 : [1, H]
    w2m : [H, H]  pre-masked     b2 : [1, H]
    w3m : [H, 2D] pre-masked     b3 : [1, 2D]
    Returns (outputs [B, D] f32, logabsdet [B] f32).
    """
    B, D = x.shape
    H = w1m.shape[1]
    Hp = _round_up(H, _LANE)

    BT = _pick_batch_tile(B)
    Bp = _round_up(B, BT)

    f32, bf16 = jnp.float32, jnp.bfloat16

    # Glue: zero-pad the hidden dim only (invariant: pads stay exactly 0 so
    # padded hidden units contribute nothing); cast MXU operands to bf16.
    # Activations keep their native D width -- no feature padding.
    xp = jnp.pad(x.astype(f32), ((0, Bp - B), (0, 0)))
    w1p = jnp.pad(w1m, ((0, 0), (0, Hp - H))).astype(bf16)
    b1p = jnp.pad(b1, ((0, 0), (0, Hp - H))).astype(f32)
    w2p = jnp.pad(w2m, ((0, Hp - H), (0, Hp - H))).astype(bf16)
    b2p = jnp.pad(b2, ((0, 0), (0, Hp - H))).astype(f32)
    w3p = jnp.pad(w3m, ((0, Hp - H), (0, 0))).astype(bf16)
    b3p = b3.astype(f32)

    const = lambda i: (0, 0)   # weights/biases stay VMEM-resident across batch tiles
    # NOTE: at production H (>= 2048) on v7x consider pipeline_mode=pl.Buffered(1)
    # on the weight BlockSpecs to halve their double-buffered VMEM footprint.

    grid_spec = pltpu.PrefetchScalarGridSpec(
        num_scalar_prefetch=0,
        grid=(Bp // BT,),
        in_specs=[
            pl.BlockSpec((BT, D), lambda i: (i, 0)),   # x (streamed, native width)
            pl.BlockSpec((D, Hp), const),              # w1
            pl.BlockSpec((1, Hp), const),              # b1
            pl.BlockSpec((Hp, Hp), const),             # w2
            pl.BlockSpec((1, Hp), const),              # b2
            pl.BlockSpec((Hp, 2 * D), const),          # w3 (merged scale|shift head)
            pl.BlockSpec((1, 2 * D), const),           # b3
        ],
        out_specs=[
            pl.BlockSpec((BT, D), lambda i: (i, 0)),
            pl.BlockSpec((BT, 1), lambda i: (i, 0)),
        ],
    )

    out_p, lad_p = pl.pallas_call(
        _maf_forward_kernel,
        out_shape=(
            jax.ShapeDtypeStruct((Bp, D), f32),
            jax.ShapeDtypeStruct((Bp, 1), f32),
        ),
        grid_spec=grid_spec,
        compiler_params=pltpu.CompilerParams(
            dimension_semantics=("parallel",),          # shard batch tiles over TCs
            vmem_limit_bytes=_pick_vmem_limit(BT, D, Hp),
        ),
    )(xp, w1p, b1p, w2p, b2p, w3p, b3p)

    # Only the (usually empty) batch padding is stripped; no feature slicing.
    return out_p[:B], lad_p[:B, 0]


# ----------------------------------------------------------------------------
# Deterministic parameter / mask construction (MADE)
# ----------------------------------------------------------------------------
def made_masks(D, H):
    in_deg = jnp.arange(1, D + 1)                             # [D]
    hid_deg = (jnp.arange(H) % max(D - 1, 1)) + 1             # [H]
    out_deg = jnp.concatenate([jnp.arange(1, D + 1),
                               jnp.arange(1, D + 1)])         # [2D] (scales|shifts)

    mask1 = (hid_deg[None, :] >= in_deg[:, None]).astype(jnp.float32)   # [D, H]
    mask2 = (hid_deg[None, :] >= hid_deg[:, None]).astype(jnp.float32)  # [H, H]
    mask3 = (out_deg[None, :] > hid_deg[:, None]).astype(jnp.float32)   # [H, 2D]
    return mask1, mask2, mask3


def init_params(key, D, H):
    k1, k2, k3 = jax.random.split(key, 3)
    w1 = jax.random.normal(k1, (D, H), jnp.float32) * (1.0 / jnp.sqrt(D))
    w2 = jax.random.normal(k2, (H, H), jnp.float32) * (1.0 / jnp.sqrt(H))
    w3 = jax.random.normal(k3, (H, 2 * D), jnp.float32) * (1.0 / jnp.sqrt(H))
    b1 = jnp.zeros((1, H), jnp.float32)
    b2 = jnp.zeros((1, H), jnp.float32)
    b3 = jnp.zeros((1, 2 * D), jnp.float32)
    return w1, b1, w2, b2, w3, b3


# ----------------------------------------------------------------------------
# Pure-JAX reference (mirrors the kernel's bf16-matmul / f32-accumulate math)
# ----------------------------------------------------------------------------
def reference_forward(x, w1m, b1, w2m, b2, w3m, b3):
    D = x.shape[-1]
    bf = jnp.bfloat16
    h1 = jax.nn.relu(jnp.dot(x.astype(bf), w1m.astype(bf),
                             preferred_element_type=jnp.float32) + b1)
    h2 = jax.nn.relu(jnp.dot(h1.astype(bf), w2m.astype(bf),
                             preferred_element_type=jnp.float32) + b2)
    params = jnp.dot(h2.astype(bf), w3m.astype(bf),
                     preferred_element_type=jnp.float32) + b3
    scale = jax.nn.softplus(params[:, :D]) + 1e-3
    shift = params[:, D:]
    out = scale * x + shift
    lad = jnp.sum(jnp.log(scale), axis=-1)
    return out, lad


if __name__ == "__main__":
    B, D, H = 2, 8, 32

    key = jax.random.PRNGKey(0)
    kx, kp = jax.random.split(key)
    x = jax.random.normal(kx, (B, D), jnp.float32)

    w1, b1, w2, b2, w3, b3 = init_params(kp, D, H)
    m1, m2, m3 = made_masks(D, H)

    # Apply static MADE masks outside the kernel (glue).
    w1m, w2m, w3m = w1 * m1, w2 * m2, w3 * m3

    outputs, logabsdet = autoregressive_transform_forward(
        x, w1m, b1, w2m, b2, w3m, b3)
    outputs = jax.block_until_ready(outputs)
    logabsdet = jax.block_until_ready(logabsdet)

    ref_out, ref_lad = reference_forward(x, w1m, b1, w2m, b2, w3m, b3)
    assert outputs.shape == (B, D) and logabsdet.shape == (B,)
    assert jnp.allclose(outputs, ref_out, atol=2e-3, rtol=2e-3)
    assert jnp.allclose(logabsdet, ref_lad, atol=2e-3, rtol=2e-3)

    print("KERNEL_OK")
</pallas_src>

<mosaic_0001>
module attributes {stable_mosaic.version = 11 : i64} {
  func.func @_maf_forward_kernel(%arg0: i32, %arg1: memref<8x8xf32, #tpu.memory_space<vmem>>, %arg2: memref<8x128xbf16, #tpu.memory_space<vmem>>, %arg3: memref<1x128xf32, #tpu.memory_space<vmem>>, %arg4: memref<128x128xbf16, #tpu.memory_space<vmem>>, %arg5: memref<1x128xf32, #tpu.memory_space<vmem>>, %arg6: memref<128x16xbf16, #tpu.memory_space<vmem>>, %arg7: memref<1x16xf32, #tpu.memory_space<vmem>>, %arg8: memref<8x8xf32, #tpu.memory_space<vmem>>, %arg9: memref<8x1xf32, #tpu.memory_space<vmem>>) attributes {dimension_semantics = [#tpu.dimension_semantics<parallel>], iteration_bounds = array<i64: 1>, scalar_prefetch = 0 : i64, scratch_operands = 0 : i64, tpu.core_type = #tpu.core_type<tc>, window_params = [{transform_indices = @transform_0, window_bounds = array<i64: 8, 8>}, {pipeline_mode = #tpu.pipeline_mode<synchronous>, transform_indices = @transform_1, window_bounds = array<i64: 8, 128>}, {pipeline_mode = #tpu.pipeline_mode<synchronous>, transform_indices = @transform_2, window_bounds = array<i64: 1, 128>}, {pipeline_mode = #tpu.pipeline_mode<synchronous>, transform_indices = @transform_3, window_bounds = array<i64: 128, 128>}, {pipeline_mode = #tpu.pipeline_mode<synchronous>, transform_indices = @transform_4, window_bounds = array<i64: 1, 128>}, {pipeline_mode = #tpu.pipeline_mode<synchronous>, transform_indices = @transform_5, window_bounds = array<i64: 128, 16>}, {pipeline_mode = #tpu.pipeline_mode<synchronous>, transform_indices = @transform_6, window_bounds = array<i64: 1, 16>}, {transform_indices = @transform_7, window_bounds = array<i64: 8, 8>}, {transform_indices = @transform_8, window_bounds = array<i64: 8, 1>}]} {
    %c0 = arith.constant 0 : index
    %c0_0 = arith.constant 0 : index
    %0 = vector.load %arg1[%c0, %c0_0] : memref<8x8xf32, #tpu.memory_space<vmem>>, vector<8x8xf32>
    %1 = arith.truncf %0 : vector<8x8xf32> to vector<8x8xbf16>
    %c0_1 = arith.constant 0 : index
    %c0_2 = arith.constant 0 : index
    %2 = vector.load %arg2[%c0_1, %c0_2] : memref<8x128xbf16, #tpu.memory_space<vmem>>, vector<8x128xbf16>
    %cst = arith.constant dense<0.000000e+00> : vector<8x128xf32>
    %3 = tpu.matmul %1, %2, %cst {dimension_numbers = #tpu.dot_dimension_numbers<[1], [0], [0], [1], [0, 0, 1, 1], [], []>} : vector<8x8xbf16>, vector<8x128xbf16>, vector<8x128xf32> -> vector<8x128xf32>
    %c0_3 = arith.constant 0 : index
    %c0_4 = arith.constant 0 : index
    %4 = vector.load %arg3[%c0_3, %c0_4] : memref<1x128xf32, #tpu.memory_space<vmem>>, vector<1x128xf32>
    %5 = vector.broadcast %4 : vector<1x128xf32> to vector<8x128xf32>
    %6 = arith.addf %3, %5 : vector<8x128xf32>
    %cst_5 = arith.constant 0.000000e+00 : f32
    %7 = vector.broadcast %cst_5 : f32 to vector<8x128xf32>
    %8 = arith.maximumf %6, %7 : vector<8x128xf32>
    %9 = arith.truncf %8 : vector<8x128xf32> to vector<8x128xbf16>
    %c0_6 = arith.constant 0 : index
    %c0_7 = arith.constant 0 : index
    %10 = vector.load %arg4[%c0_6, %c0_7] : memref<128x128xbf16, #tpu.memory_space<vmem>>, vector<128x128xbf16>
    %cst_8 = arith.constant dense<0.000000e+00> : vector<8x128xf32>
    %11 = tpu.matmul %9, %10, %cst_8 {dimension_numbers = #tpu.dot_dimension_numbers<[1], [0], [0], [1], [0, 0, 1, 1], [], []>} : vector<8x128xbf16>, vector<128x128xbf16>, vector<8x128xf32> -> vector<8x128xf32>
    %c0_9 = arith.constant 0 : index
    %c0_10 = arith.constant 0 : index
    %12 = vector.load %arg5[%c0_9, %c0_10] : memref<1x128xf32, #tpu.memory_space<vmem>>, vector<1x128xf32>
    %13 = vector.broadcast %12 : vector<1x128xf32> to vector<8x128xf32>
    %14 = arith.addf %11, %13 : vector<8x128xf32>
    %cst_11 = arith.constant 0.000000e+00 : f32
    %15 = vector.broadcast %cst_11 : f32 to vector<8x128xf32>
    %16 = arith.maximumf %14, %15 : vector<8x128xf32>
    %17 = arith.truncf %16 : vector<8x128xf32> to vector<8x128xbf16>
    %c0_12 = arith.constant 0 : index
    %c0_13 = arith.constant 0 : index
    %18 = vector.load %arg6[%c0_12, %c0_13] : memref<128x16xbf16, #tpu.memory_space<vmem>>, vector<128x16xbf16>
    %cst_14 = arith.constant dense<0.000000e+00> : vector<8x16xf32>
    %19 = tpu.matmul %17, %18, %cst_14 {dimension_numbers = #tpu.dot_dimension_numbers<[1], [0], [0], [1], [0, 0, 1, 1], [], []>} : vector<8x128xbf16>, vector<128x16xbf16>, vector<8x16xf32> -> vector<8x16xf32>
    %c0_15 = arith.constant 0 : index
    %c0_16 = arith.constant 0 : index
    %20 = vector.load %arg7[%c0_15, %c0_16] : memref<1x16xf32, #tpu.memory_space<vmem>>, vector<1x16xf32>
    %21 = vector.broadcast %20 : vector<1x16xf32> to vector<8x16xf32>
    %22 = arith.addf %19, %21 : vector<8x16xf32>
    %23 = vector.extract_strided_slice %22 {offsets = [0, 0], sizes = [8, 8], strides = [1, 1]} : vector<8x16xf32> to vector<8x8xf32>
    %24 = vector.extract_strided_slice %22 {offsets = [0, 8], sizes = [8, 8], strides = [1, 1]} : vector<8x16xf32> to vector<8x8xf32>
    %cst_17 = arith.constant 0.000000e+00 : f32
    %25 = vector.broadcast %cst_17 : f32 to vector<8x8xf32>
    %26 = arith.maximumf %23, %25 : vector<8x8xf32>
    %27 = vector.broadcast %cst_17 : f32 to vector<8x8xf32>
    %28 = arith.subf %23, %27 : vector<8x8xf32>
    %29 = arith.cmpf one, %28, %28 : vector<8x8xf32>
    %30 = vector.broadcast %cst_17 : f32 to vector<8x8xf32>
    %31 = arith.addf %23, %30 : vector<8x8xf32>
    %32 = math.absf %28 : vector<8x8xf32>
    %cst_18 = arith.constant 0.000000e+00 : f32
    %33 = vector.broadcast %cst_18 : f32 to vector<8x8xf32>
    %34 = arith.subf %33, %32 : vector<8x8xf32>
    %35 = math.exp %34 : vector<8x8xf32>
    %36 = math.log1p %35 : vector<8x8xf32>
    %37 = arith.addf %26, %36 : vector<8x8xf32>
    %38 = arith.select %29, %31, %37 : vector<8x8xi1>, vector<8x8xf32>
    %cst_19 = arith.constant 1.000000e-03 : f32
    %39 = vector.broadcast %cst_19 : f32 to vector<8x8xf32>
    %40 = arith.addf %38, %39 : vector<8x8xf32>
    %41 = arith.mulf %40, %0 : vector<8x8xf32>
    %42 = arith.addf %41, %24 : vector<8x8xf32>
    %c0_20 = arith.constant 0 : index
    %c0_21 = arith.constant 0 : index
    %43 = vector.load %arg8[%c0_20, %c0_21] : memref<8x8xf32, #tpu.memory_space<vmem>>, vector<8x8xf32>
    tpu.vector_store %arg8[%c0_20, %c0_21], %42 {strides = array<i32>} : memref<8x8xf32, #tpu.memory_space<vmem>>, vector<8x8xf32>,
    %44 = math.log %40 : vector<8x8xf32>
    %cst_22 = arith.constant dense<0.000000e+00> : vector<8xf32>
    %45 = vector.multi_reduction <add>, %44, %cst_22 [1] : vector<8x8xf32> to vector<8xf32>
    %46 = vector.shape_cast %45 : vector<8xf32> to vector<8x1xf32>
    %c0_23 = arith.constant 0 : index
    %c0_24 = arith.constant 0 : index
    %47 = vector.load %arg9[%c0_23, %c0_24] : memref<8x1xf32, #tpu.memory_space<vmem>>, vector<8x1xf32>
    tpu.vector_store %arg9[%c0_23, %c0_24], %46 {strides = array<i32>} : memref<8x1xf32, #tpu.memory_space<vmem>>, vector<8x1xf32>,
    return
  }
  func.func @transform_0(%arg0: i32) -> (i32, i32) {
    %c0_i32 = arith.constant 0 : i32
    %c0_i32_0 = arith.constant 0 : i32
    return %arg0, %c0_i32 : i32, i32
  }
  func.func @transform_1(%arg0: i32) -> (i32, i32) {
    %c0_i32 = arith.constant 0 : i32
    %c0_i32_0 = arith.constant 0 : i32
    %c0_i32_1 = arith.constant 0 : i32
    return %c0_i32, %c0_i32_0 : i32, i32
  }
  func.func @transform_2(%arg0: i32) -> (i32, i32) {
    %c0_i32 = arith.constant 0 : i32
    %c0_i32_0 = arith.constant 0 : i32
    %c0_i32_1 = arith.constant 0 : i32
    return %c0_i32, %c0_i32_0 : i32, i32
  }
  func.func @transform_3(%arg0: i32) -> (i32, i32) {
    %c0_i32 = arith.constant 0 : i32
    %c0_i32_0 = arith.constant 0 : i32
    %c0_i32_1 = arith.constant 0 : i32
    return %c0_i32, %c0_i32_0 : i32, i32
  }
  func.func @transform_4(%arg0: i32) -> (i32, i32) {
    %c0_i32 = arith.constant 0 : i32
    %c0_i32_0 = arith.constant 0 : i32
    %c0_i32_1 = arith.constant 0 : i32
    return %c0_i32, %c0_i32_0 : i32, i32
  }
  func.func @transform_5(%arg0: i32) -> (i32, i32) {
    %c0_i32 = arith.constant 0 : i32
    %c0_i32_0 = arith.constant 0 : i32
    %c0_i32_1 = arith.constant 0 : i32
    return %c0_i32, %c0_i32_0 : i32, i32
  }
  func.func @transform_6(%arg0: i32) -> (i32, i32) {
    %c0_i32 = arith.constant 0 : i32
    %c0_i32_0 = arith.constant 0 : i32
    %c0_i32_1 = arith.constant 0 : i32
    return %c0_i32, %c0_i32_0 : i32, i32
  }
  func.func @transform_7(%arg0: i32) -> (i32, i32) {
    %c0_i32 = arith.constant 0 : i32
    %c0_i32_0 = arith.constant 0 : i32
    return %arg0, %c0_i32 : i32, i32
  }
  func.func @transform_8(%arg0: i32) -> (i32, i32) {
    %c0_i32 = arith.constant 0 : i32
    %c0_i32_0 = arith.constant 0 : i32
    return %arg0, %c0_i32 : i32, i32
  }
}

</mosaic_0001>

<bundles_post_ra>
// kernel: autoregressive_transform_forward.1
= control target key start
LH: loop header
LB: loop body
LE: loop exit
PB: predicated region body
PF: predicated region fallthrough
CT: control target
= control target key end

     0   :  { %vm43_vm0 = vcmask 1043456   ;;  %v465_v0 = vmov 0.0   ;;  %vm466_vm1 = vmmov 0   ;;  %vm39_vm2 = vcmask 64512   ;;  %s613_s1 = inlined_call_operand.vmem [shape: bf16[8,128], index: 1, kind: input, shape index: {}]   ;;  %s614_s0 = inlined_call_operand.vmem [shape: f32[8,8], index: 0, kind: input, shape index: {}]   ;;  %s615_s3 = inlined_call_operand.vmem [shape: bf16[128,128], index: 3, kind: input, shape index: {}]   ;;  %s616_s5 = inlined_call_operand.vmem [shape: bf16[128,16], index: 5, kind: input, shape index: {}]   ;;  %s617_s2 = inlined_call_operand.vmem [shape: f32[1,128], index: 2, kind: input, shape index: {}]   ;;  %s618_s4 = inlined_call_operand.vmem [shape: f32[1,128], index: 4, kind: input, shape index: {}]   ;;  %s619_s6 = inlined_call_operand.vmem [shape: f32[1,16], index: 6, kind: input, shape index: {}]   ;;  %s620_s8 = inlined_call_operand.vmem [shape: f32[8,1], index: 8, kind: output, shape index: {1}]   ;;  %s621_s7 = inlined_call_operand.vmem [shape: f32[8,8], index: 7, kind: output, shape index: {0}]  }
   0x1   :  { %394 = vmatprep.subr.bf16.mxu0 %v465_v0  ;;  %v31_v1 = vld [vmem:[%s613_s1] sm:$0xf]  ;;  %396 = vmatprep.mubr.msk.bf16.mxu0 %vm466_vm1, %v465_v0  ;;  %v444_v6 = vld [vmem:[%s615_s3 + $0x8] sm:$0xff]   ;;  %v445_v7 = vld [vmem:[%s615_s3 + $0x10] sm:$0xff]   ;;  %vm344_vm5 = vcmask 7168  }
   0x2   :  { %v522_v2 = vld [vmem:[%s614_s0] sm:$0xff]  ;;  %v45_v3 = vsel %vm43_vm0, %v31_v1, 0  ;;  %400 = vmatprep.subr.bf16.mxu1 %v465_v0  ;;  %416 = vmatprep.mubr.msk.bf16.mxu1 %vm466_vm1, %v465_v0  ;;  %v446_v8 = vld [vmem:[%s615_s3 + $0x18] sm:$0xff]   ;;  %v448_v10 = vld [vmem:[%s615_s3 + $0x28] sm:$0xff]  }
   0x3   :  { %v30_v4 = vpack.c.bf16 %v522_v2, %v522_v2  ;;  %v443_v5 = vld [vmem:[%s615_s3] sm:$0xff]   ;;  %395 = vmatpush3.bf16.msra.mxu0 %v45_v3  ;;  %v449_v11 = vld [vmem:[%s615_s3 + $0x30] sm:$0xff]   ;;  %v450_v12 = vld [vmem:[%s615_s3 + $0x38] sm:$0xff]  }
   0x4   :  { %401 = vmatpush3.bf16.msra.mxu1 %v443_v5  ;;  %420 = vmatprep.subr.bf16.mxu0 %v465_v0  ;;  %v447_v9 = vld [vmem:[%s615_s3 + $0x20] sm:$0xff]   ;;  %v452_v14 = vld [vmem:[%s616_s5 + $0x8] sm:$0xff]   ;;  %v453_v15 = vld [vmem:[%s616_s5 + $0x10] sm:$0xff]  }
   0x5   :  { %402 = vmatprep.subr.bf16.mxu1 %v465_v0  ;;  %v451_v13 = vld [vmem:[%s616_s5] sm:$0xff]   ;;  %v454_v16 = vld [vmem:[%s616_s5 + $0x18] sm:$0xff]   ;;  %v456_v18 = vld [vmem:[%s616_s5 + $0x28] sm:$0xff]  }
   0x6   :  { %397 = vmatmul.mubr.msk.bf16.vlgmr.msra.gmra.mrb[0].mxu0 %vm39_vm2, %v30_v4  ;;  %v455_v17 = vld [vmem:[%s616_s5 + $0x20] sm:$0xff]   ;;  %v457_v27 = vld [vmem:[%s616_s5 + $0x30] sm:$0xff]   ;;  %v458_v28 = vld [vmem:[%s616_s5 + $0x38] sm:$0xff]  }
   0x7   :  { %436 = vmatprep.mubr.msk.bf16.mxu0 %vm466_vm1, %v465_v0  ;;  %421 = vmatpush3.bf16.msra.mxu0 %v451_v13  ;;  %v354_v19 = vld [vmem:[%s617_s2] ss:$0 sm:$0xff] }
   0x8   :  { %403 = vmatpush3.bf16.msra.mxu1 %v444_v6  ;;  %422 = vmatprep.subr.bf16.mxu0 %v465_v0  ;;  %v356_v29 = vld [vmem:[%s618_s4] ss:$0 sm:$0xff]  ;;  %s467_s4 = smov 120  }
   0x9   :  { %404 = vmatprep.subr.bf16.mxu1 %v465_v0  ;;  %v365_v37 = vld [vmem:[%s619_s6] ss:$0 sm:$0xff] }
   0xb   :  { %423 = vmatpush3.bf16.msra.mxu0 %v452_v14 }
   0xc   :  { %405 = vmatpush3.bf16.msra.mxu1 %v445_v7  ;;  %424 = vmatprep.subr.bf16.mxu0 %v465_v0 }
   0xd   :  { %406 = vmatprep.subr.bf16.mxu1 %v465_v0 }
   0xf   :  { %425 = vmatpush3.bf16.msra.mxu0 %v453_v15 }
  0x10   :  { %407 = vmatpush3.bf16.msra.mxu1 %v446_v8  ;;  %426 = vmatprep.subr.bf16.mxu0 %v465_v0 }
  0x11   :  { %408 = vmatprep.subr.bf16.mxu1 %v465_v0 }
  0x13   :  { %427 = vmatpush3.bf16.msra.mxu0 %v454_v16 }
  0x14   :  { %409 = vmatpush3.bf16.msra.mxu1 %v447_v9  ;;  %428 = vmatprep.subr.bf16.mxu0 %v465_v0 }
  0x15   :  { %410 = vmatprep.subr.bf16.mxu1 %v465_v0 }
  0x17   :  { %429 = vmatpush3.bf16.msra.mxu0 %v455_v17 }
  0x18   :  { %411 = vmatpush3.bf16.msra.mxu1 %v448_v10  ;;  %430 = vmatprep.subr.bf16.mxu0 %v465_v0 }
  0x19   :  { %412 = vmatprep.subr.bf16.mxu1 %v465_v0 }
  0x1b   :  { %431 = vmatpush3.bf16.msra.mxu0 %v456_v18 }
  0x1c   :  { %413 = vmatpush3.bf16.msra.mxu1 %v449_v11  ;;  %432 = vmatprep.subr.bf16.mxu0 %v465_v0 }
  0x1d   :  { %414 = vmatprep.subr.bf16.mxu1 %v465_v0 }
  0x1f   :  { %433 = vmatpush3.bf16.msra.mxu0 %v457_v27 }
  0x20   :  { %415 = vmatpush3.bf16.msra.mxu1 %v450_v12  ;;  %434 = vmatprep.subr.bf16.mxu0 %v465_v0 }
  0x23   :  { %435 = vmatpush3.bf16.msra.mxu0 %v458_v28 }
  0xd9   :  { %v81_v20 = vpop.f32.mrb[0].mxu0 }
  0xda   :  { %v82_v21 = vadd.f32 %v354_v19, %v81_v20  ;;  %v398_v22 = vpop.f32.mrb[1].mxu0 }
  0xdb   :  { %v84_v23 = vpop.f32.mrb[2].mxu0 }
  0xdc   :  { %v87_v24 = vmax.f32 %v82_v21, 0.0  ;;  %v399_v25 = vpop.f32.mrb[3].mxu0 }
  0xde   :  { %v88_v26 = vpack.c.bf16 %v87_v24, %v87_v24 }
  0xe0   :  { %417 = vmatmul.mubr.bf16.vlgmr.msra.gmra.mrb[0].mxu1 %v88_v26 }
 0x1b3   :  { %v194_v30 = vpop.f32.mrb[0].mxu1 }
 0x1b4   :  { %v195_v31 = vadd.f32 %v356_v29, %v194_v30  ;;  %v418_v32 = vpop.f32.mrb[1].mxu1 }
 0x1b5   :  { %v197_v33 = vpop.f32.mrb[2].mxu1 }
 0x1b6   :  { %v200_v34 = vmax.f32 %v195_v31, 0.0  ;;  %v419_v35 = vpop.f32.mrb[3].mxu1 }
 0x1b8   :  { %v201_v36 = vpack.c.bf16 %v200_v34, %v200_v34 }
 0x1ba   :  { %437 = vmatmul.mubr.bf16.vlgmr.msra.gmra.mrb[4].mxu0 %v201_v36 }
 0x28d   :  { %v307_v38 = vpop.f32.mrb[4].mxu0 }
 0x28e   :  { %v308_v39 = vadd.f32 %v365_v37, %v307_v38  ;;  %v438_v40 = vpop.f32.mrb[5].mxu0 }
 0x28f   :  { %v310_v41 = vpop.f32.mrb[6].mxu0 }
 0x290   :  { %v316_v42 = vand.u32 2147483647, %v308_v39  ;;  %v439_v43 = vpop.f32.mrb[7].mxu0  ;;  %v313_v54 = vmax.f32 %v308_v39, 0.0  ;;  %vm314_vm4 = vcmp.ne.f32.partialorder %v308_v39, %v308_v39 }
 0x292   :  { %v317_v44 = vsub.f32 0.0, %v316_v42 }
 0x294   :  { %v318_v45 = vmul.f32 1.442695, %v317_v44 }
 0x296   :  { %459 = vpow2.f32 %v318_v45 }
 0x2a0   :  { %v460_v46 = vpop.eup %459 }
 0x2a1   :  { %v320_v47 = vadd.f32 1.0, %v460_v46  ;;  %v323_v48 = vmul.f32 -0.5, %v460_v46  ;;  %v326_v50 = vand.u32 2147483647, %v460_v46 }
 0x2a3   :  { %461 = vlog2.f32 %v320_v47  ;;  %v324_v49 = vadd.f32 1.0, %v323_v48  ;;  %vm327_vm3 = vcmp.lt.f32.partialorder %v326_v50, 0.0004427343 }
 0x2a5   :  { %v325_v53 = vmul.f32 %v460_v46, %v324_v49 }
 0x2ad   :  { %v462_v51 = vpop.eup %461 }
 0x2ae   :  { %v322_v52 = vmul.f32 0.6931472, %v462_v51 }
 0x2b0   :  { %v328_v55 = vsel %vm327_vm3, %v325_v53, %v322_v52 }
 0x2b1   :  { %v329_v56 = vadd.f32 %v328_v55, %v313_v54 }
 0x2b3   :  { %v330_v57 = vsel %vm314_vm4, %v308_v39, %v329_v56 }
 0x2b4   :  { %v331_v58 = vadd.f32 0.001, %v330_v57 }
 0x2b6   :  { %463 = vlog2.f32 %v331_v58  ;;  %v332_v63 = vmul.f32 %v331_v58, %v522_v2 }
 0x2c0   :  { %v464_v59 = vpop.eup %463 }
 0x2c1   :  { %v340_v60 = vmul.f32 0.6931472, %v464_v59 }
 0x2c3   :  { %v341_v61 = vsel %vm39_vm2, %v340_v60, 0.0 }
 0x2c4   :  { %342 = vadd.xlane.f32.xlu0 %v341_v61 }
 0x2da   :  { %334 = vrot.lane.b32.xlu0 %v308_v39, %s467_s4 }
 0x351   :  { %v343_v62 = vpop.xlane.xlu0 %342 }
 0x352   :  { %345 = vst.msk [vmem:[%s620_s8] sm:$0xff] %vm344_vm5, %v343_v62 }
 0x355   :  { %v335_v0 = vpop.permute.xlu0 %334 }
 0x356   :  { %v337_v1 = vadd.f32 %v335_v0, %v332_v63 }
 0x358   :  { %338 = vst.msk [vmem:[%s621_s7] sm:$0xff] %vm39_vm2, %v337_v1 }

</bundles_post_ra>
